<compile_context>
chip_gen: v7x
topology: tpu7x:2x2x1
jax: 0.10.0
libtpu: 0.0.40
codegen_flags: <defaults>
</compile_context>

<pallas_src>
import jax
import jax.numpy as jnp
from jax.experimental import pallas as pl
from jax.experimental.pallas import tpu as pltpu


def _maxpool2x2_kernel(x_ref, o_ref):
    # x_ref: (TR, 2*W) -- row r = [image row 2i | image row 2i+1] of one (n, c).
    # o_ref: (TR, W//2) -- pooled output row i of that (n, c) image.
    two_w = x_ref.shape[-1]
    w = two_w // 2
    wo = w // 2
    top_even = x_ref[:, pl.ds(0, wo, stride=2)]      # x[2i,   0::2]
    top_odd = x_ref[:, pl.ds(1, wo, stride=2)]       # x[2i,   1::2]
    bot_even = x_ref[:, pl.ds(w, wo, stride=2)]      # x[2i+1, 0::2]
    bot_odd = x_ref[:, pl.ds(w + 1, wo, stride=2)]   # x[2i+1, 1::2]
    o_ref[...] = jnp.maximum(jnp.maximum(top_even, top_odd),
                             jnp.maximum(bot_even, bot_odd))


def _vertical_max_kernel(x_ref, o_ref):
    # Fallback half-kernel: only contiguous lane slices + element-wise maximum.
    w = x_ref.shape[-1] // 2
    o_ref[...] = jnp.maximum(x_ref[:, :w], x_ref[:, w:])


def _pick_block_rows(n_rows):
    # Largest sublane-aligned block (<= 2048 rows) that tiles the row count.
    for tr in (2048, 1024, 512, 256, 128, 64, 32, 16, 8):
        if n_rows % tr == 0:
            return tr
    return n_rows  # single full block (block dims == array dims is always legal)


def _pool_rows_pallas(x2, n_rows, w):
    wo = w // 2
    tr = _pick_block_rows(n_rows)
    return pl.pallas_call(
        _maxpool2x2_kernel,
        out_shape=jax.ShapeDtypeStruct((n_rows, wo), x2.dtype),
        grid=(n_rows // tr,),
        in_specs=[pl.BlockSpec((tr, 2 * w), lambda i: (i, 0))],
        out_specs=pl.BlockSpec((tr, wo), lambda i: (i, 0)),
        compiler_params=pltpu.CompilerParams(
            dimension_semantics=("parallel",)),
    )(x2)


def _pool_rows_fallback(x2, n_rows, w):
    # Vertical pair-max in the kernel (contiguous slices only); horizontal
    # pair-max finished by an XLA strided slice.  Only used if stride-2 lane
    # reads are unavailable on this Mosaic build.
    tr = _pick_block_rows(n_rows)
    v = pl.pallas_call(
        _vertical_max_kernel,
        out_shape=jax.ShapeDtypeStruct((n_rows, w), x2.dtype),
        grid=(n_rows // tr,),
        in_specs=[pl.BlockSpec((tr, 2 * w), lambda i: (i, 0))],
        out_specs=pl.BlockSpec((tr, w), lambda i: (i, 0)),
        compiler_params=pltpu.CompilerParams(
            dimension_semantics=("parallel",)),
    )(x2)
    return jnp.maximum(v[:, 0::2], v[:, 1::2])


def layer8_forward(x):
    """MaxPool2d(2, 2) + flatten.  x: (N, C, H, W) -> (N, C*(H//2)*(W//2))."""
    n, c, h, w = x.shape
    ho, wo = h // 2, w // 2
    if (h % 2) or (w % 2):
        # PyTorch floor-mode pooling drops a trailing odd row / column.
        x = x[:, :, : 2 * ho, : 2 * wo]
        h, w = 2 * ho, 2 * wo
    n_rows = n * c * ho

    # Metadata-only reshape of contiguous NCHW data: each row = two image rows.
    x2 = x.reshape(n_rows, 2 * w)

    try:
        out2 = _pool_rows_pallas(x2, n_rows, w)
        out2 = jax.block_until_ready(out2)
    except Exception:  # pragma: no cover - Mosaic without strided lane loads
        out2 = _pool_rows_fallback(x2, n_rows, w)

    # Flatten in PyTorch NCHW order (metadata-only reshape again).
    return out2.reshape(n, c * ho * wo)


if __name__ == "__main__":
    key = jax.random.PRNGKey(0)
    n, c, h, w = 2, 4, 16, 16
    x = jax.random.normal(key, (n, c, h, w), dtype=jnp.float32)

    out = layer8_forward(x)
    out = jax.block_until_ready(out)
    assert out.shape == (n, c * (h // 2) * (w // 2)), out.shape

    # Exact reference (max-pool is pure selection -> bitwise equality).
    ref = jnp.max(x.reshape(n, c, h // 2, 2, w // 2, 2), axis=(3, 5)).reshape(n, -1)
    assert bool(jnp.array_equal(out, ref))

    print("KERNEL_OK")
</pallas_src>

<mosaic_0001>
module attributes {stable_mosaic.version = 11 : i64} {
  func.func @_maxpool2x2_kernel(%arg0: i32, %arg1: memref<64x32xf32, #tpu.memory_space<vmem>>, %arg2: memref<64x8xf32, #tpu.memory_space<vmem>>) attributes {dimension_semantics = [#tpu.dimension_semantics<parallel>], iteration_bounds = array<i64: 1>, scalar_prefetch = 0 : i64, scratch_operands = 0 : i64, tpu.core_type = #tpu.core_type<tc>, window_params = [{transform_indices = @transform_0, window_bounds = array<i64: 64, 32>}, {transform_indices = @transform_1, window_bounds = array<i64: 64, 8>}]} {
    %c0 = arith.constant 0 : index
    %c0_0 = arith.constant 0 : index
    %0 = tpu.strided_load %arg1[%c0, %c0_0] {strides = array<i32: 1, 2>} : memref<64x32xf32, #tpu.memory_space<vmem>>, vector<64x8xf32>
    %c0_1 = arith.constant 0 : index
    %c1 = arith.constant 1 : index
    %1 = tpu.strided_load %arg1[%c0_1, %c1] {strides = array<i32: 1, 2>} : memref<64x32xf32, #tpu.memory_space<vmem>>, vector<64x8xf32>
    %c0_2 = arith.constant 0 : index
    %c16 = arith.constant 16 : index
    %2 = tpu.strided_load %arg1[%c0_2, %c16] {strides = array<i32: 1, 2>} : memref<64x32xf32, #tpu.memory_space<vmem>>, vector<64x8xf32>
    %c0_3 = arith.constant 0 : index
    %c17 = arith.constant 17 : index
    %3 = tpu.strided_load %arg1[%c0_3, %c17] {strides = array<i32: 1, 2>} : memref<64x32xf32, #tpu.memory_space<vmem>>, vector<64x8xf32>
    %4 = arith.maximumf %0, %1 : vector<64x8xf32>
    %5 = arith.maximumf %2, %3 : vector<64x8xf32>
    %6 = arith.maximumf %4, %5 : vector<64x8xf32>
    %c0_4 = arith.constant 0 : index
    %c0_5 = arith.constant 0 : index
    %7 = vector.load %arg2[%c0_4, %c0_5] : memref<64x8xf32, #tpu.memory_space<vmem>>, vector<64x8xf32>
    tpu.vector_store %arg2[%c0_4, %c0_5], %6 {strides = array<i32>} : memref<64x8xf32, #tpu.memory_space<vmem>>, vector<64x8xf32>,
    return
  }
  func.func @transform_0(%arg0: i32) -> (i32, i32) {
    %c0_i32 = arith.constant 0 : i32
    %c0_i32_0 = arith.constant 0 : i32
    return %arg0, %c0_i32 : i32, i32
  }
  func.func @transform_1(%arg0: i32) -> (i32, i32) {
    %c0_i32 = arith.constant 0 : i32
    %c0_i32_0 = arith.constant 0 : i32
    return %arg0, %c0_i32 : i32, i32
  }
}

module attributes {stable_mosaic.version = 11 : i64} {
  func.func @_vertical_max_kernel(%arg0: i32, %arg1: memref<64x32xf32, #tpu.memory_space<vmem>>, %arg2: memref<64x16xf32, #tpu.memory_space<vmem>>) attributes {dimension_semantics = [#tpu.dimension_semantics<parallel>], iteration_bounds = array<i64: 1>, scalar_prefetch = 0 : i64, scratch_operands = 0 : i64, tpu.core_type = #tpu.core_type<tc>, window_params = [{transform_indices = @transform_0, window_bounds = array<i64: 64, 32>}, {transform_indices = @transform_1, window_bounds = array<i64: 64, 16>}]} {
    %c0 = arith.constant 0 : index
    %c0_0 = arith.constant 0 : index
    %0 = vector.load %arg1[%c0, %c0_0] : memref<64x32xf32, #tpu.memory_space<vmem>>, vector<64x16xf32>
    %c0_1 = arith.constant 0 : index
    %c16 = arith.constant 16 : index
    %1 = vector.load %arg1[%c0_1, %c16] : memref<64x32xf32, #tpu.memory_space<vmem>>, vector<64x16xf32>
    %2 = arith.maximumf %0, %1 : vector<64x16xf32>
    %c0_2 = arith.constant 0 : index
    %c0_3 = arith.constant 0 : index
    %3 = vector.load %arg2[%c0_2, %c0_3] : memref<64x16xf32, #tpu.memory_space<vmem>>, vector<64x16xf32>
    tpu.vector_store %arg2[%c0_2, %c0_3], %2 {strides = array<i32>} : memref<64x16xf32, #tpu.memory_space<vmem>>, vector<64x16xf32>,
    return
  }
  func.func @transform_0(%arg0: i32) -> (i32, i32) {
    %c0_i32 = arith.constant 0 : i32
    %c0_i32_0 = arith.constant 0 : i32
    return %arg0, %c0_i32 : i32, i32
  }
  func.func @transform_1(%arg0: i32) -> (i32, i32) {
    %c0_i32 = arith.constant 0 : i32
    %c0_i32_0 = arith.constant 0 : i32
    return %arg0, %c0_i32 : i32, i32
  }
}

</mosaic_0001>

<bundles_post_ra>
// kernel: tpu_custom_call.1
= control target key start
LH: loop header
LB: loop body
LE: loop exit
PB: predicated region body
PF: predicated region fallthrough
CT: control target
= control target key end

     0   :  { %s70_s10 = smov 112   ;;  %vm56_vm0 = vcmask 130048   ;;  %s137_s0 = inlined_call_operand.vmem [shape: f32[64,32], index: 0, kind: input, shape index: {}]   ;;  %s138_s1 = inlined_call_operand.vmem [shape: f32[64,16], index: 1, kind: output, shape index: {}]  }
   0x1   :  { %v10_v0 = vld [vmem:[%s137_s0 + $0x10] sm:$0xff]  ;;  %v8_v1 = vld [vmem:[%s137_s0] sm:$0xff]  ;;  %v11_v2 = vld [vmem:[%s137_s0 + $0x18] sm:$0xff] }
   0x2   :  { %28 = vrot.lane.b32.xlu1 %v10_v0, %s70_s10  ;;  %24 = vrot.lane.b32.xlu0 %v8_v1, %s70_s10  ;;  %v9_v3 = vld [vmem:[%s137_s0 + $0x8] sm:$0xff]  ;;  %v12_v5 = vld [vmem:[%s137_s0 + $0x20] sm:$0xff] }
   0x3   :  { %v13_v4 = vld [vmem:[%s137_s0 + $0x28] sm:$0xff]  ;;  %v15_v6 = vld [vmem:[%s137_s0 + $0x38] sm:$0xff]  ;;  %v14_v7 = vld [vmem:[%s137_s0 + $0x30] sm:$0xff] }
   0x6   :  { %30 = vrot.lane.b32.xlu1 %v11_v2, %s70_s10  ;;  %26 = vrot.lane.b32.xlu0 %v9_v3, %s70_s10 }
   0xa   :  { %34 = vrot.lane.b32.xlu1 %v13_v4, %s70_s10  ;;  %32 = vrot.lane.b32.xlu0 %v12_v5, %s70_s10 }
   0xe   :  { %38 = vrot.lane.b32.xlu1 %v15_v6, %s70_s10  ;;  %36 = vrot.lane.b32.xlu0 %v14_v7, %s70_s10 }
  0x74   :  { %v29_v8 = vpop.permute.xlu1 %28  ;;  %v25_v9 = vpop.permute.xlu0 %24 }
  0x75   :  { %v50_v10 = vmax.f32 %v10_v0, %v29_v8  ;;  %v48_v11 = vmax.f32 %v8_v1, %v25_v9 }
  0x77   :  { %59 = vst.msk [vmem:[%s138_s1 + $0x10] sm:$0xff] %vm56_vm0, %v50_v10  ;;  %57 = vst.msk [vmem:[%s138_s1] sm:$0xff] %vm56_vm0, %v48_v11 }
  0x78   :  { %v31_v12 = vpop.permute.xlu1 %30  ;;  %v27_v13 = vpop.permute.xlu0 %26 }
  0x79   :  { %v51_v14 = vmax.f32 %v11_v2, %v31_v12  ;;  %v49_v15 = vmax.f32 %v9_v3, %v27_v13 }
  0x7b   :  { %60 = vst.msk [vmem:[%s138_s1 + $0x18] sm:$0xff] %vm56_vm0, %v51_v14  ;;  %58 = vst.msk [vmem:[%s138_s1 + $0x8] sm:$0xff] %vm56_vm0, %v49_v15 }
  0x7c   :  { %v35_v16 = vpop.permute.xlu1 %34  ;;  %v33_v17 = vpop.permute.xlu0 %32 }
  0x7d   :  { %v53_v18 = vmax.f32 %v13_v4, %v35_v16  ;;  %v52_v19 = vmax.f32 %v12_v5, %v33_v17 }
  0x7f   :  { %62 = vst.msk [vmem:[%s138_s1 + $0x28] sm:$0xff] %vm56_vm0, %v53_v18  ;;  %61 = vst.msk [vmem:[%s138_s1 + $0x20] sm:$0xff] %vm56_vm0, %v52_v19 }
  0x80   :  { %v39_v20 = vpop.permute.xlu1 %38  ;;  %v37_v21 = vpop.permute.xlu0 %36 }
  0x81   :  { %v55_v22 = vmax.f32 %v15_v6, %v39_v20  ;;  %v54_v23 = vmax.f32 %v14_v7, %v37_v21 }
  0x83   :  { %64 = vst.msk [vmem:[%s138_s1 + $0x38] sm:$0xff] %vm56_vm0, %v55_v22  ;;  %63 = vst.msk [vmem:[%s138_s1 + $0x30] sm:$0xff] %vm56_vm0, %v54_v23 }

</bundles_post_ra>
